<compile_context>
chip_gen: v7x
topology: tpu7x:2x2x1
jax: 0.10.0
libtpu: 0.0.40
codegen_flags: <defaults>
</compile_context>

<pallas_src>
import jax
import jax.numpy as jnp
from jax.experimental import pallas as pl
from jax.experimental.pallas import tpu as pltpu


def _protonet_head_kernel(feat_ref, w1_ref, b1_ref, w2_ref, b2_ref, out_ref):
    # feat_ref: (TB, H*W, C) bf16, channel on the lane axis.
    x = feat_ref[...].astype(jnp.float32)
    # AdaptiveAvgPool2d(1) + flatten(1)  -> (TB, C); reduce over sublane axis.
    pooled = jnp.mean(x, axis=1)
    # embedding: Linear -> ReLU -> Dropout(eval: identity) -> Linear
    h = jnp.dot(pooled, w1_ref[...], preferred_element_type=jnp.float32) + b1_ref[...]
    h = jnp.maximum(h, 0.0)
    e = jnp.dot(h, w2_ref[...], preferred_element_type=jnp.float32) + b2_ref[...]
    # F.normalize(x, dim=-1): x / max(||x||_2, eps), eps=1e-12.
    # Equivalent rsqrt form: x * rsqrt(max(||x||^2, eps^2)).
    sq = jnp.sum(e * e, axis=-1, keepdims=True)
    inv = jax.lax.rsqrt(jnp.maximum(sq, 1e-24))
    out_ref[...] = (e * inv).astype(out_ref.dtype)


def _embed_batch(feat_nchw, w1, b1, w2, b2, *, tb=8):
    """(B, C, H, W) backbone features -> (B, E) L2-normalized embeddings."""
    B, C, H, W = feat_nchw.shape
    E = w2.shape[1]
    HW = H * W

    # Channel-last, lane-dense layout; bf16 over HBM halves feature traffic.
    feat = jnp.transpose(feat_nchw, (0, 2, 3, 1)).reshape(B, HW, C)
    feat = feat.astype(jnp.bfloat16)

    # Zero-pad embedding dims up to the 128-lane width (results are unchanged:
    # padded w/b columns are zero, ReLU(0)=0, padded rows of w2 contribute 0,
    # and the norm over padded zeros equals the norm over the real E columns).
    Ep = ((E + 127) // 128) * 128
    if Ep != E:
        w1 = jnp.pad(w1, ((0, 0), (0, Ep - E)))
        b1 = jnp.pad(b1, ((0, 0), (0, Ep - E)))
        w2 = jnp.pad(w2, ((0, Ep - E), (0, Ep - E)))
        b2 = jnp.pad(b2, ((0, 0), (0, Ep - E)))

    # Pad batch to a multiple of the tile so every grid step is a full tile.
    Bp = ((B + tb - 1) // tb) * tb
    if Bp != B:
        feat = jnp.pad(feat, ((0, Bp - B), (0, 0), (0, 0)))

    out = pl.pallas_call(
        _protonet_head_kernel,
        out_shape=jax.ShapeDtypeStruct((Bp, Ep), jnp.float32),
        grid=(Bp // tb,),
        in_specs=[
            pl.BlockSpec((tb, HW, C), lambda i: (i, 0, 0)),
            # Constant index_maps -> weights/biases stay resident in VMEM.
            pl.BlockSpec((C, Ep), lambda i: (0, 0)),
            pl.BlockSpec((1, Ep), lambda i: (0, 0)),
            pl.BlockSpec((Ep, Ep), lambda i: (0, 0)),
            pl.BlockSpec((1, Ep), lambda i: (0, 0)),
        ],
        out_specs=pl.BlockSpec((tb, Ep), lambda i: (i, 0)),
        compiler_params=pltpu.CompilerParams(
            dimension_semantics=("parallel",)),
    )(feat, w1, b1, w2, b2)

    return out[:B, :E]


def protonet_forward(support_feat, query_feat, params):
    """Equivalent of PrototypicalNetwork.forward(support_images, query_images)
    (post-backbone), with use_task_attention / use_self_attention disabled.
    Support and query sets are batched into one kernel invocation."""
    w1, b1, w2, b2 = params
    Bs = support_feat.shape[0]
    feats = jnp.concatenate([support_feat, query_feat], axis=0)
    emb = _embed_batch(feats, w1, b1, w2, b2)
    return emb[:Bs], emb[Bs:]


def _reference(x, w1, b1, w2, b2):
    """Pure-JAX reference of the same head (on the bf16-rounded features the
    kernel consumes) for correctness checking."""
    B, C = x.shape[0], x.shape[1]
    xb = x.astype(jnp.bfloat16).astype(jnp.float32)
    p = xb.reshape(B, C, -1).mean(-1)
    h = jnp.maximum(
        jnp.dot(p, w1, precision=jax.lax.Precision.HIGHEST) + b1, 0.0)
    e = jnp.dot(h, w2, precision=jax.lax.Precision.HIGHEST) + b2
    n = jnp.maximum(jnp.linalg.norm(e, axis=-1, keepdims=True), 1e-12)
    return e / n


if __name__ == "__main__":
    key = jax.random.PRNGKey(0)
    # Small synthetic shapes: backbone_dim=128 (stand-in for 2048), embedding_dim=64,
    # 4x4 backbone spatial map, 2 support / 4 query samples.
    Bs, Bq = 2, 4
    C, H, W = 128, 4, 4
    E = 64

    ks, kq, k1, k2, k3, k4 = jax.random.split(key, 6)
    support_feat = jax.random.normal(ks, (Bs, C, H, W), jnp.float32)
    query_feat = jax.random.normal(kq, (Bq, C, H, W), jnp.float32)

    # Deterministic parameter init mimicking nn.Linear defaults (U[-1/sqrt(fan_in), +]).
    bnd1 = 1.0 / float(jnp.sqrt(jnp.float32(C)))
    w1 = jax.random.uniform(k1, (C, E), jnp.float32, -bnd1, bnd1)
    b1 = jax.random.uniform(k2, (1, E), jnp.float32, -bnd1, bnd1)
    bnd2 = 1.0 / float(jnp.sqrt(jnp.float32(E)))
    w2 = jax.random.uniform(k3, (E, E), jnp.float32, -bnd2, bnd2)
    b2 = jax.random.uniform(k4, (1, E), jnp.float32, -bnd2, bnd2)
    params = (w1, b1, w2, b2)

    s_out, q_out = protonet_forward(support_feat, query_feat, params)
    jax.block_until_ready((s_out, q_out))

    s_ref = _reference(support_feat, w1, b1, w2, b2)
    q_ref = _reference(query_feat, w1, b1, w2, b2)
    assert s_out.shape == (Bs, E) and q_out.shape == (Bq, E)
    assert jnp.allclose(s_out, s_ref, atol=1e-4), "support features mismatch"
    assert jnp.allclose(q_out, q_ref, atol=1e-4), "query features mismatch"

    print("KERNEL_OK")
</pallas_src>

<mosaic_0001>
module attributes {stable_mosaic.version = 11 : i64} {
  func.func @_protonet_head_kernel(%arg0: i32, %arg1: memref<8x16x128xbf16, #tpu.memory_space<vmem>>, %arg2: memref<128x128xf32, #tpu.memory_space<vmem>>, %arg3: memref<1x128xf32, #tpu.memory_space<vmem>>, %arg4: memref<128x128xf32, #tpu.memory_space<vmem>>, %arg5: memref<1x128xf32, #tpu.memory_space<vmem>>, %arg6: memref<8x128xf32, #tpu.memory_space<vmem>>) attributes {dimension_semantics = [#tpu.dimension_semantics<parallel>], iteration_bounds = array<i64: 1>, scalar_prefetch = 0 : i64, scratch_operands = 0 : i64, tpu.core_type = #tpu.core_type<tc>, window_params = [{transform_indices = @transform_0, window_bounds = array<i64: 8, 16, 128>}, {pipeline_mode = #tpu.pipeline_mode<synchronous>, transform_indices = @transform_1, window_bounds = array<i64: 128, 128>}, {pipeline_mode = #tpu.pipeline_mode<synchronous>, transform_indices = @transform_2, window_bounds = array<i64: 1, 128>}, {pipeline_mode = #tpu.pipeline_mode<synchronous>, transform_indices = @transform_3, window_bounds = array<i64: 128, 128>}, {pipeline_mode = #tpu.pipeline_mode<synchronous>, transform_indices = @transform_4, window_bounds = array<i64: 1, 128>}, {transform_indices = @transform_5, window_bounds = array<i64: 8, 128>}]} {
    %c0 = arith.constant 0 : index
    %c0_0 = arith.constant 0 : index
    %c0_1 = arith.constant 0 : index
    %0 = vector.load %arg1[%c0, %c0_0, %c0_1] : memref<8x16x128xbf16, #tpu.memory_space<vmem>>, vector<8x16x128xbf16>
    %1 = arith.extf %0 : vector<8x16x128xbf16> to vector<8x16x128xf32>
    %cst = arith.constant dense<0.000000e+00> : vector<8x128xf32>
    %2 = vector.multi_reduction <add>, %1, %cst [1] : vector<8x16x128xf32> to vector<8x128xf32>
    %cst_2 = arith.constant 1.600000e+01 : f32
    %3 = vector.broadcast %cst_2 : f32 to vector<8x128xf32>
    %4 = arith.divf %2, %3 : vector<8x128xf32>
    %c0_3 = arith.constant 0 : index
    %c0_4 = arith.constant 0 : index
    %5 = vector.load %arg2[%c0_3, %c0_4] : memref<128x128xf32, #tpu.memory_space<vmem>>, vector<128x128xf32>
    %cst_5 = arith.constant dense<0.000000e+00> : vector<8x128xf32>
    %6 = tpu.matmul %4, %5, %cst_5 {dimension_numbers = #tpu.dot_dimension_numbers<[1], [0], [0], [1], [0, 0, 1, 1], [], []>} : vector<8x128xf32>, vector<128x128xf32>, vector<8x128xf32> -> vector<8x128xf32>
    %c0_6 = arith.constant 0 : index
    %c0_7 = arith.constant 0 : index
    %7 = vector.load %arg3[%c0_6, %c0_7] : memref<1x128xf32, #tpu.memory_space<vmem>>, vector<1x128xf32>
    %8 = vector.broadcast %7 : vector<1x128xf32> to vector<8x128xf32>
    %9 = arith.addf %6, %8 : vector<8x128xf32>
    %cst_8 = arith.constant 0.000000e+00 : f32
    %10 = vector.broadcast %cst_8 : f32 to vector<8x128xf32>
    %11 = arith.maximumf %9, %10 : vector<8x128xf32>
    %c0_9 = arith.constant 0 : index
    %c0_10 = arith.constant 0 : index
    %12 = vector.load %arg4[%c0_9, %c0_10] : memref<128x128xf32, #tpu.memory_space<vmem>>, vector<128x128xf32>
    %cst_11 = arith.constant dense<0.000000e+00> : vector<8x128xf32>
    %13 = tpu.matmul %11, %12, %cst_11 {dimension_numbers = #tpu.dot_dimension_numbers<[1], [0], [0], [1], [0, 0, 1, 1], [], []>} : vector<8x128xf32>, vector<128x128xf32>, vector<8x128xf32> -> vector<8x128xf32>
    %c0_12 = arith.constant 0 : index
    %c0_13 = arith.constant 0 : index
    %14 = vector.load %arg5[%c0_12, %c0_13] : memref<1x128xf32, #tpu.memory_space<vmem>>, vector<1x128xf32>
    %15 = vector.broadcast %14 : vector<1x128xf32> to vector<8x128xf32>
    %16 = arith.addf %13, %15 : vector<8x128xf32>
    %17 = arith.mulf %16, %16 : vector<8x128xf32>
    %cst_14 = arith.constant dense<0.000000e+00> : vector<8xf32>
    %18 = vector.multi_reduction <add>, %17, %cst_14 [1] : vector<8x128xf32> to vector<8xf32>
    %19 = vector.shape_cast %18 : vector<8xf32> to vector<8x1xf32>
    %cst_15 = arith.constant 1.000000e-24 : f32
    %20 = vector.broadcast %cst_15 : f32 to vector<8x1xf32>
    %21 = arith.maximumf %19, %20 : vector<8x1xf32>
    %22 = math.rsqrt %21 : vector<8x1xf32>
    %23 = vector.broadcast %22 : vector<8x1xf32> to vector<8x128xf32>
    %24 = arith.mulf %16, %23 : vector<8x128xf32>
    %c0_16 = arith.constant 0 : index
    %c0_17 = arith.constant 0 : index
    %25 = vector.load %arg6[%c0_16, %c0_17] : memref<8x128xf32, #tpu.memory_space<vmem>>, vector<8x128xf32>
    tpu.vector_store %arg6[%c0_16, %c0_17], %24 {strides = array<i32>} : memref<8x128xf32, #tpu.memory_space<vmem>>, vector<8x128xf32>,
    return
  }
  func.func @transform_0(%arg0: i32) -> (i32, i32, i32) {
    %c0_i32 = arith.constant 0 : i32
    %c0_i32_0 = arith.constant 0 : i32
    %c0_i32_1 = arith.constant 0 : i32
    return %arg0, %c0_i32, %c0_i32_0 : i32, i32, i32
  }
  func.func @transform_1(%arg0: i32) -> (i32, i32) {
    %c0_i32 = arith.constant 0 : i32
    %c0_i32_0 = arith.constant 0 : i32
    %c0_i32_1 = arith.constant 0 : i32
    return %c0_i32, %c0_i32_0 : i32, i32
  }
  func.func @transform_2(%arg0: i32) -> (i32, i32) {
    %c0_i32 = arith.constant 0 : i32
    %c0_i32_0 = arith.constant 0 : i32
    %c0_i32_1 = arith.constant 0 : i32
    return %c0_i32, %c0_i32_0 : i32, i32
  }
  func.func @transform_3(%arg0: i32) -> (i32, i32) {
    %c0_i32 = arith.constant 0 : i32
    %c0_i32_0 = arith.constant 0 : i32
    %c0_i32_1 = arith.constant 0 : i32
    return %c0_i32, %c0_i32_0 : i32, i32
  }
  func.func @transform_4(%arg0: i32) -> (i32, i32) {
    %c0_i32 = arith.constant 0 : i32
    %c0_i32_0 = arith.constant 0 : i32
    %c0_i32_1 = arith.constant 0 : i32
    return %c0_i32, %c0_i32_0 : i32, i32
  }
  func.func @transform_5(%arg0: i32) -> (i32, i32) {
    %c0_i32 = arith.constant 0 : i32
    %c0_i32_0 = arith.constant 0 : i32
    return %arg0, %c0_i32 : i32, i32
  }
}

</mosaic_0001>

<bundles_post_ra>
// kernel: tpu_custom_call.1
= control target key start
LH: loop header
LB: loop body
LE: loop exit
PB: predicated region body
PF: predicated region fallthrough
CT: control target
= control target key end

     0   :  { %10 = vsyncpa [#allocation3], 0  ;;  %s841_s0 = inlined_call_operand.hbm [shape: bf16[8,16,128], index: 0, kind: input, shape index: {}]   ;;  %s842_s1 = inlined_call_operand.hbm [shape: f32[128,128], index: 1, kind: input, shape index: {}]   ;;  %s843_s2 = inlined_call_operand.vmem [shape: f32[1,128], index: 2, kind: input, shape index: {}]   ;;  %s844_s3 = inlined_call_operand.hbm [shape: f32[128,128], index: 3, kind: input, shape index: {}]   ;;  %s845_s4 = inlined_call_operand.vmem [shape: f32[1,128], index: 4, kind: input, shape index: {}]   ;;  %s846_s5 = inlined_call_operand.hbm [shape: f32[8,128], index: 5, kind: output, shape index: {}]  }
   0x1   :  { %11 = vsyncpa [#allocation6], 0 }
   0x2   :  { %12 = vsyncpa [#allocation4], 0  ;;  %s692_s18 = smov [#allocation5]   ;;  %s598_s22 = scalar_lea.hbm %s842_s1, 2048 }
   0x3   :  { %s30_s19 = sshll.u32 %s692_s18, 4  ;;  %p599_p0 = scmp.ne.s32.totalorder %s842_s1, %s598_s22  ;;  %s31_s19 = int_to_ptr.vmem [resolvable:$true] %s30_s19 }
   0x4   :  { %p602_p1 = scmp.lt.u32.totalorder %s598_s22, %s842_s1 }
   0x6   :  { %p604_p2 = pnand %p602_p1, %p599_p0 }
   0x8   :  { %607 = shalt.err (!%p604_p2)
}
   0x9   :  { %s608_s27 = scalar_lea.vmem %s31_s19, 2048  ;;  %p613_p4 = scmp.lt.s32.totalorder %s31_s19, %s31_s19 }
   0xa   :  { %p609_p3 = scmp.ne.s32.totalorder %s31_s19, %s608_s27  ;;  %p614_p5 = scmp.lt.s32.totalorder %s608_s27, %s608_s27 }
   0xc   :  { %p615_p6 = por %p614_p5, %p613_p4 }
   0xe   :  { %p616_p7 = pnand %p615_p6, %p609_p3 }
  0x10   :  { %619 = shalt.err (!%p616_p7)
}
  0x11   :  { %s693_s28 = smov 128   ;;  %s694_s29 = smov 8  }
  0x12   :  { %36 = dma.hbm_to_vmem [thread:$0]  %s842_s1, 2048, %s31_s19, [#allocation6], %s693_s28, %s693_s28, %s694_s29  }
  0x13   :  { %s695_s7 = smov [#allocation2]   ;;  %s620_s11 = scalar_lea.hbm %s841_s0, 1024 }
  0x14   :  { %s18_s8 = sshll.u32 %s695_s7, 4  ;;  %p621_p8 = scmp.ne.s32.totalorder %s841_s0, %s620_s11  ;;  %s19_s8 = int_to_ptr.vmem [resolvable:$true] %s18_s8 }
  0x15   :  { %p624_p9 = scmp.lt.u32.totalorder %s620_s11, %s841_s0 }
  0x17   :  { %p626_p10 = pnand %p624_p9, %p621_p8 }
  0x19   :  { %629 = shalt.err (!%p626_p10)
}
  0x1a   :  { %s630_s16 = scalar_lea.vmem %s19_s8, 1024  ;;  %p635_p12 = scmp.lt.s32.totalorder %s19_s8, %s19_s8 }
  0x1b   :  { %p631_p11 = scmp.ne.s32.totalorder %s19_s8, %s630_s16  ;;  %p636_p13 = scmp.lt.s32.totalorder %s630_s16, %s630_s16 }
  0x1d   :  { %p637_p0 = por %p636_p13, %p635_p12 }
  0x1f   :  { %p638_p1 = pnand %p637_p0, %p631_p11 }
  0x21   :  { %641 = shalt.err (!%p638_p1)
}
  0x22   :  { %s696_s1 = smov 64   ;;  %s697_s17 = smov 4  }
  0x23   :  { %24 = dma.hbm_to_vmem [thread:$0]  %s841_s0, 1024, %s19_s8, [#allocation3], %s696_s1, %s696_s1, %s697_s17  }
  0x24   :  { %s698_s20 = smov [#allocation7]   ;;  %s642_s24 = scalar_lea.hbm %s844_s3, 2048 }
  0x25   :  { %s44_s21 = sshll.u32 %s698_s20, 4  ;;  %p643_p2 = scmp.ne.s32.totalorder %s844_s3, %s642_s24  ;;  %s45_s21 = int_to_ptr.vmem [resolvable:$true] %s44_s21 }
  0x26   :  { %p646_p3 = scmp.lt.u32.totalorder %s642_s24, %s844_s3 }
  0x28   :  { %p648_p4 = pnand %p646_p3, %p643_p2 }
  0x2a   :  { %651 = shalt.err (!%p648_p4)
}
  0x2b   :  { %s652_s6 = scalar_lea.vmem %s45_s21, 2048  ;;  %p657_p6 = scmp.lt.s32.totalorder %s45_s21, %s45_s21 }
  0x2c   :  { %p653_p5 = scmp.ne.s32.totalorder %s45_s21, %s652_s6  ;;  %p658_p7 = scmp.lt.s32.totalorder %s652_s6, %s652_s6 }
  0x2e   :  { %p659_p8 = por %p658_p7, %p657_p6 }
  0x30   :  { %p660_p9 = pnand %p659_p8, %p653_p5 }
  0x32   :  { %663 = shalt.err (!%p660_p9)
}
  0x33   :  { %50 = dma.hbm_to_vmem [thread:$0]  %s844_s3, 2048, %s45_s21, [#allocation6], %s693_s28, %s693_s28, %s694_s29  }
  0x34   :  { %686 = dma.done.wait [#allocation3], 1024  }
  0x35   :  { %687 = vsyncadd [#allocation3], 4294966272 }
  0x36   :  { %688 = dma.done.wait [#allocation6], 4096  }
  0x37   :  { %689 = vsyncadd [#allocation6], 4294963200  ;;  %v699_v0 = vmov 0.0|0.0   ;;  %vm700_vm0 = vmmov 0   ;;  %v701_v1 = vmov 0.0   ;;  %v159_v2 = vld [vmem:[#allocation5] sm:$0xff] }
  0x38   :  { %537 = vmatprep.subr.bf16.mxu0 %v699_v0  ;;  %499 = vmatprep.mubr.msk.f32.mxu0 %vm700_vm0, %v701_v1  ;;  %v160_v3 = vld [vmem:[#allocation5 + $0x8] sm:$0xff]  ;;  %v161_v4 = vld [vmem:[#allocation5 + $0x10] sm:$0xff]  ;;  %v162_v6 = vld [vmem:[#allocation5 + $0x18] sm:$0xff]  ;;  %vm190_vm1 = vcmask 1041409   ;;  %vm192_vm2 = vcmask 1042434   ;;  %vm194_vm3 = vcmask 1043459  }
  0x39   :  { %561 = vmatprep.subr.bf16.mxu1 %v699_v0  ;;  %534 = vmatprep.mubr.msk.f32.mxu1 %vm700_vm0, %v701_v1  ;;  %v538_v5 = vpack.c.bf16 %v160_v3, %v159_v2  ;;  %v163_v7 = vld [vmem:[#allocation5 + $0x20] sm:$0xff]  ;;  %v164_v8 = vld [vmem:[#allocation5 + $0x28] sm:$0xff]  ;;  %v777_v9 = vld [vmem:[#allocation5 + $0x30] sm:$0xff]  ;;  %v541_v12 = vpack.c.bf16 %v162_v6, %v161_v4  ;;  %vm196_vm4 = vcmask 1044484   ;;  %vm198_vm5 = vcmask 1045509   ;;  %s702_s9 = smov [#allocation8]  }
  0x3a   :  { %v166_v10 = vld [vmem:[#allocation5 + $0x38] sm:$0xff]  ;;  %v779_v11 = vld [vmem:[#allocation5 + $0x40] sm:$0xff]  ;;  %v781_v13 = vld [vmem:[#allocation5 + $0x48] sm:$0xff]  ;;  %v544_v18 = vpack.c.bf16 %v164_v8, %v163_v7  ;;  %vm200_vm6 = vcmask 1046534   ;;  %vm202_vm7 = vcmask 1047559   ;;  %s382_s10 = sshll.u32 %s702_s9, 4  ;;  %s383_s10 = int_to_ptr.vmem [resolvable:$true] %s382_s10 }
  0x3b   :  { %539 = vmatpush3.bf16.msra.mxu0 %v538_v5  ;;  %v783_v14 = vld [vmem:[#allocation5 + $0x50] sm:$0xff]  ;;  %v785_v15 = vld [vmem:[#allocation5 + $0x58] sm:$0xff]  ;;  %v788_v16 = vld [vmem:[#allocation5 + $0x60] sm:$0xff]  ;;  %v547_v19 = vpack.c.bf16 %v166_v10, %v777_v9  ;;  %v550_v20 = vpack.c.bf16 %v781_v13, %v779_v11  ;;  %p669_p11 = scmp.lt.s32.totalorder %s383_s10, %s383_s10 }
  0x3c   :  { %540 = vmatprep.subr.bf16.mxu0 %v699_v0  ;;  %v790_v17 = vld [vmem:[#allocation5 + $0x68] sm:$0xff]  ;;  %v553_v21 = vpack.c.bf16 %v785_v15, %v783_v14  ;;  %v395_v22 = vld [vmem:[#allocation2] sm:$0xff]   ;;  %v427_v28 = vld [vmem:[#allocation2 + $0x10] sm:$0xff]  }
  0x3d   :  { %v426_v23 = vld [vmem:[#allocation2 + $0x8] sm:$0xff]   ;;  %v556_v24 = vpack.c.bf16 %v790_v17, %v788_v16  ;;  %v396_v25 = vunpack.c.l.bf16 %v395_v22  ;;  %v397_v26 = vunpack.c.h.bf16 %v395_v22  ;;  %v428_v29 = vld [vmem:[#allocation2 + $0x18] sm:$0xff]   ;;  %v429_v30 = vld [vmem:[#allocation2 + $0x20] sm:$0xff]   ;;  %v404_v32 = vunpack.c.l.bf16 %v427_v28 }
  0x3e   :  { %v400_v27 = vunpack.c.l.bf16 %v426_v23  ;;  %v401_v31 = vunpack.c.h.bf16 %v426_v23  ;;  %v405_v33 = vunpack.c.h.bf16 %v427_v28  ;;  %v408_v34 = vunpack.c.l.bf16 %v428_v29  ;;  %v430_v35 = vld [vmem:[#allocation2 + $0x28] sm:$0xff]   ;;  %v431_v36 = vld [vmem:[#allocation2 + $0x30] sm:$0xff]   ;;  %v432_v37 = vld [vmem:[#allocation2 + $0x38] sm:$0xff]  }
  0x3f   :  { %542 = vmatpush3.bf16.msra.mxu0 %v541_v12  ;;  %v409_v38 = vunpack.c.h.bf16 %v428_v29  ;;  %v412_v39 = vunpack.c.l.bf16 %v429_v30  ;;  %v413_v40 = vunpack.c.h.bf16 %v429_v30  ;;  %v416_v41 = vunpack.c.l.bf16 %v430_v35  ;;  %v279_v14 = vld [vmem:[#allocation7 + $0x18] sm:$0xff] }
  0x40   :  { %543 = vmatprep.subr.bf16.mxu0 %v699_v0  ;;  %v417_v42 = vunpack.c.h.bf16 %v430_v35  ;;  %v420_v43 = vunpack.c.l.bf16 %v431_v36  ;;  %v421_v44 = vunpack.c.h.bf16 %v431_v36  ;;  %v424_v45 = vunpack.c.l.bf16 %v432_v37 }
  0x41   :  { %v425_v46 = vunpack.c.h.bf16 %v432_v37  ;;  %v94_v47 = vadd.f32 %v397_v26, %v396_v25  ;;  %v101_v48 = vadd.f32 %v401_v31, %v400_v27  ;;  %v108_v49 = vadd.f32 %v405_v33, %v404_v32 }
  0x42   :  { %v115_v50 = vadd.f32 %v409_v38, %v408_v34  ;;  %v122_v51 = vadd.f32 %v413_v40, %v412_v39  ;;  %v129_v52 = vadd.f32 %v417_v42, %v416_v41  ;;  %v136_v53 = vadd.f32 %v421_v44, %v420_v43 }
  0x43   :  { %545 = vmatpush3.bf16.msra.mxu0 %v544_v18  ;;  %v95_v54 = vrot.slane %v94_v47, 4  ;;  %v102_v55 = vrot.slane %v101_v48, 4  ;;  %v109_v56 = vrot.slane %v108_v49, 4  ;;  %v143_v57 = vadd.f32 %v425_v46, %v424_v45  ;;  %v276_v45 = vld [vmem:[#allocation7] sm:$0xff]  ;;  %v277_v46 = vld [vmem:[#allocation7 + $0x8] sm:$0xff] }
  0x44   :  { %546 = vmatprep.subr.bf16.mxu0 %v699_v0  ;;  %v116_v58 = vrot.slane %v115_v50, 4  ;;  %v123_v59 = vrot.slane %v122_v51, 4  ;;  %v130_v60 = vrot.slane %v129_v52, 4  ;;  %v137_v61 = vrot.slane %v136_v53, 4 }
  0x45   :  { %v96_v62 = vadd.f32 %v95_v54, %v94_v47  ;;  %v103_v63 = vadd.f32 %v102_v55, %v101_v48  ;;  %v110_v1 = vadd.f32 %v109_v56, %v108_v49  ;;  %v144_v2 = vrot.slane %v143_v57, 4  ;;  %v173_v47 = vld [vmem:[#allocation5 + $0x70] sm:$0xff]  ;;  %v174_v48 = vld [vmem:[#allocation5 + $0x78] sm:$0xff] }
  0x46   :  { %v117_v3 = vadd.f32 %v116_v58, %v115_v50  ;;  %v124_v4 = vadd.f32 %v123_v59, %v122_v51  ;;  %v131_v5 = vadd.f32 %v130_v60, %v129_v52  ;;  %v138_v6 = vadd.f32 %v137_v61, %v136_v53  ;;  %v278_v55 = vld [vmem:[#allocation7 + $0x10] sm:$0xff] }
  0x47   :  { %548 = vmatpush3.bf16.msra.mxu0 %v547_v19  ;;  %v97_v7 = vrot.slane %v96_v62, 2  ;;  %v104_v8 = vrot.slane %v103_v63, 2  ;;  %v111_v9 = vrot.slane %v110_v1, 2  ;;  %v145_v10 = vadd.f32 %v144_v2, %v143_v57  ;;  %v281_v2 = vld [vmem:[#allocation7 + $0x28] sm:$0xff] }
  0x48   :  { %549 = vmatprep.subr.bf16.mxu0 %v699_v0  ;;  %v118_v12 = vrot.slane %v117_v3, 2  ;;  %v125_v18 = vrot.slane %v124_v4, 2  ;;  %v132_v22 = vrot.slane %v131_v5, 2  ;;  %v139_v23 = vrot.slane %v138_v6, 2 }
  0x49   :  { %v98_v25 = vadd.f32 %v97_v7, %v96_v62  ;;  %v105_v26 = vadd.f32 %v104_v8, %v103_v63  ;;  %v112_v27 = vadd.f32 %v111_v9, %v110_v1  ;;  %v146_v19 = vrot.slane %v145_v10, 2  ;;  %v280_v1 = vld [vmem:[#allocation7 + $0x20] sm:$0xff]  ;;  %v285_v8 = vld [vmem:[#allocation7 + $0x48] sm:$0xff] }
  0x4a   :  { %v119_v28 = vadd.f32 %v118_v12, %v117_v3  ;;  %v126_v29 = vadd.f32 %v125_v18, %v124_v4  ;;  %v133_v30 = vadd.f32 %v132_v22, %v131_v5  ;;  %v140_v31 = vadd.f32 %v139_v23, %v138_v6  ;;  %v282_v4 = vld [vmem:[#allocation7 + $0x30] sm:$0xff]  ;;  %v283_v5 = vld [vmem:[#allocation7 + $0x38] sm:$0xff]  ;;  %v284_v7 = vld [vmem:[#allocation7 + $0x40] sm:$0xff] }
  0x4b   :  { %551 = vmatpush3.bf16.msra.mxu0 %v550_v20  ;;  %v99_v32 = vrot.slane %v98_v25, 1  ;;  %v106_v33 = vrot.slane %v105_v26, 1  ;;  %v113_v34 = vrot.slane %v112_v27, 1  ;;  %v147_v35 = vadd.f32 %v146_v19, %v145_v10  ;;  %v286_v10 = vld [vmem:[#allocation7 + $0x50] sm:$0xff]  ;;  %v287_v12 = vld [vmem:[#allocation7 + $0x58] sm:$0xff]  ;;  %v288_v22 = vld [vmem:[#allocation7 + $0x60] sm:$0xff] }
  0x4c   :  { %552 = vmatprep.subr.bf16.mxu0 %v699_v0  ;;  %v120_v36 = vrot.slane %v119_v28, 1  ;;  %v127_v37 = vrot.slane %v126_v29, 1  ;;  %v134_v38 = vrot.slane %v133_v30, 1  ;;  %v141_v39 = vrot.slane %v140_v31, 1  ;;  %v289_v23 = vld [vmem:[#allocation7 + $0x68] sm:$0xff] }
  0x4d   :  { %v100_v40 = vadd.f32 %v99_v32, %v98_v25  ;;  %v107_v41 = vadd.f32 %v106_v33, %v105_v26  ;;  %v114_v42 = vadd.f32 %v113_v34, %v112_v27  ;;  %v148_v43 = vrot.slane %v147_v35, 1  ;;  %v290_v26 = vld [vmem:[#allocation7 + $0x70] sm:$0xff]  ;;  %v291_v27 = vld [vmem:[#allocation7 + $0x78] sm:$0xff]  ;;  %v393_v33 = vld [vmem:[%s845_s4] ss:$0 sm:$0xff] }
  0x4e   :  { %v121_v11 = vadd.f32 %v120_v36, %v119_v28  ;;  %v128_v13 = vadd.f32 %v127_v37, %v126_v29  ;;  %v135_v20 = vadd.f32 %v134_v38, %v133_v30  ;;  %v142_v44 = vadd.f32 %v141_v39, %v140_v31  ;;  %v392_v28 = vld [vmem:[%s843_s2] ss:$0 sm:$0xff]  ;;  %s664_s2 = scalar_lea.vmem %s383_s10, 128 }
  0x4f   :  { %554 = vmatpush3.bf16.msra.mxu0 %v553_v21  ;;  %v149_v49 = vadd.f32 %v148_v43, %v147_v35  ;;  %v151_v50 = vmul.f32 0.0625, %v100_v40  ;;  %v152_v51 = vmul.f32 0.0625, %v107_v41  ;;  %v153_v52 = vmul.f32 0.0625, %v114_v42  ;;  %p665_p10 = scmp.ne.s32.totalorder %s383_s10, %s664_s2  ;;  %p670_p12 = scmp.lt.s32.totalorder %s664_s2, %s664_s2 }
  0x50   :  { %555 = vmatprep.subr.bf16.mxu0 %v699_v0  ;;  %v154_v53 = vmul.f32 0.0625, %v121_v11  ;;  %v155_v54 = vmul.f32 0.0625, %v128_v13  ;;  %v156_v15 = vmul.f32 0.0625, %v135_v20  ;;  %v562_v56 = vpack.c.bf16 %v277_v46, %v276_v45 }
  0x51   :  { %v191_v21 = vsel %vm190_vm1, %v152_v51, %v151_v50  ;;  %v559_v57 = vpack.c.bf16 %v174_v48, %v173_v47  ;;  %v157_v58 = vmul.f32 0.0625, %v142_v44  ;;  %v158_v60 = vmul.f32 0.0625, %v149_v49  ;;  %p671_p13 = por %p670_p12, %p669_p11 }
  0x52   :  { %v193_v59 = vsel %vm192_vm2, %v153_v52, %v191_v21  ;;  %563 = vmatpush3.bf16.msra.mxu1 %v562_v56  ;;  %v565_v62 = vpack.c.bf16 %v279_v14, %v278_v55  ;;  %v568_v3 = vpack.c.bf16 %v281_v2, %v280_v1  ;;  %v571_v6 = vpack.c.bf16 %v283_v5, %v282_v4 }
  0x53   :  { %557 = vmatpush3.bf16.msra.mxu0 %v556_v24  ;;  %v195_v61 = vsel %vm194_vm3, %v154_v53, %v193_v59  ;;  %564 = vmatprep.subr.bf16.mxu1 %v699_v0  ;;  %v574_v9 = vpack.c.bf16 %v285_v8, %v284_v7  ;;  %v577_v18 = vpack.c.bf16 %v287_v12, %v286_v10  ;;  %p672_p0 = pnand %p671_p13, %p665_p10 }
  0x54   :  { %558 = vmatprep.subr.bf16.mxu0 %v699_v0  ;;  %v197_v63 = vsel %vm196_vm4, %v155_v54, %v195_v61  ;;  %v580_v25 = vpack.c.bf16 %v289_v23, %v288_v22  ;;  %v583_v19 = vpack.c.bf16 %v291_v27, %v290_v26 }
  0x55   :  { %v199_v16 = vsel %vm198_vm5, %v156_v15, %v197_v63 }
  0x56   :  { %v201_v17 = vsel %vm200_vm6, %v157_v58, %v199_v16  ;;  %566 = vmatpush3.bf16.msra.mxu1 %v565_v62 }
  0x57   :  { %560 = vmatpush3.bf16.msra.mxu0 %v559_v57  ;;  %v203_v24 = vsel %vm202_vm7, %v158_v60, %v201_v17  ;;  %567 = vmatprep.subr.bf16.mxu1 %v699_v0 }
  0x5a   :  { %500 = vmatmul.mubr.f32.vlgmr.msra.gmra.mrb[0].mxu0 %v203_v24  ;;  %569 = vmatpush3.bf16.msra.mxu1 %v568_v3 }
  0x5b   :  { %570 = vmatprep.subr.bf16.mxu1 %v699_v0 }
  0x5e   :  { %572 = vmatpush3.bf16.msra.mxu1 %v571_v6 }
  0x5f   :  { %573 = vmatprep.subr.bf16.mxu1 %v699_v0 }
  0x62   :  { %575 = vmatpush3.bf16.msra.mxu1 %v574_v9 }
  0x63   :  { %576 = vmatprep.subr.bf16.mxu1 %v699_v0 }
  0x66   :  { %578 = vmatpush3.bf16.msra.mxu1 %v577_v18 }
  0x67   :  { %579 = vmatprep.subr.bf16.mxu1 %v699_v0 }
  0x6a   :  { %581 = vmatpush3.bf16.msra.mxu1 %v580_v25 }
  0x6b   :  { %582 = vmatprep.subr.bf16.mxu1 %v699_v0 }
  0x6e   :  { %584 = vmatpush3.bf16.msra.mxu1 %v583_v19 }
 0x12d   :  { %v271_v29 = vpop.f32.mrb[0].mxu0 }
 0x12e   :  { %v272_v30 = vadd.f32 %v392_v28, %v271_v29  ;;  %v501_v31 = vpop.f32.mrb[1].mxu0 }
 0x130   :  { %v275_v32 = vmax.f32 %v272_v30, 0.0 }
 0x132   :  { %535 = vmatmul.mubr.f32.vlgmr.msra.gmra.mrb[0].mxu1 %v275_v32 }
 0x205   :  { %v365_v34 = vpop.f32.mrb[0].mxu1 }
 0x206   :  { %v366_v35 = vadd.f32 %v393_v33, %v365_v34  ;;  %v536_v0 = vpop.f32.mrb[1].mxu1 }
 0x208   :  { %v369_v36 = vmul.f32 %v366_v35, %v366_v35 }
 0x20a   :  { %370 = vadd.xlane.f32.xlu0 %v369_v36 }
 0x297   :  { %v371_v37 = vpop.xlane.xlu0 %370 }
 0x298   :  { %v372_v38 = vmax.f32 %v371_v37, 1e-24 }
 0x29a   :  { %596 = vrsqrt.f32 %v372_v38 }
 0x2a4   :  { %v597_v39 = vpop.eup %596 }
 0x2a5   :  { %v374_v40 = vmul.f32 %v597_v39, %v366_v35 }
 0x2a7   :  { %375 = vst [vmem:[#allocation8] sm:$0xff] %v374_v40 }
 0x2a8   :  { %675 = shalt.err (!%p672_p0)
}
 0x2a9   :  { %s676_s12 = scalar_lea.hbm %s846_s5, 128 }
 0x2aa   :  { %p677_p1 = scmp.ne.s32.totalorder %s846_s5, %s676_s12  ;;  %p680_p2 = scmp.lt.u32.totalorder %s676_s12, %s846_s5 }
 0x2ac   :  { %p682_p3 = pnand %p680_p2, %p677_p1 }
 0x2ae   :  { %685 = shalt.err (!%p682_p3)
}
 0x2af   :  { %385 = dma.vmem_to_hbm [thread:$0]  %s383_s10, 128, %s846_s5, [#allocation4]  }
 0x2b0   :  { %690 = dma.done.wait [#allocation4], 128  }
 0x2b1   :  { %691 = vsyncadd [#allocation4], 4294967168 }
 0x2b2   :  { %389 = vsyncpa [#allocation3], 1 }
 0x2b3   :  { %390 = vsyncpa [#allocation6], 1 }
 0x2b4   :  { %391 = vsyncpa [#allocation4], 1 }

</bundles_post_ra>
